<compile_context>
chip_gen: v7x
topology: tpu7x:2x2x1
jax: 0.10.0
libtpu: 0.0.40
codegen_flags: <defaults>
</compile_context>

<pallas_src>
import math

import jax
import jax.numpy as jnp
from jax.experimental import pallas as pl
from jax.experimental.pallas import tpu as pltpu


# ----------------------------- Pallas kernel -------------------------------
def _time_embedding_kernel(t_ref,      # VMEM: [B, 1]        int32 timesteps
                           freq_ref,   # VMEM: [1, d_model]  f32 (freqs, pair-repeated)
                           phase_ref,  # VMEM: [1, d_model]  f32 (0, pi/2 interleave)
                           w1_ref,     # VMEM: [d_model, dim] bf16
                           b1_ref,     # VMEM: [1, dim]       f32
                           w2_ref,     # VMEM: [dim, TN]      bf16 (N tile)
                           b2_ref,     # VMEM: [1, TN]        f32  (N tile)
                           out_ref):   # VMEM: [B, TN]        f32  (N tile)
    # Sinusoidal embedding, interleaved exactly like the PyTorch table:
    #   emb[b, 2i]   = sin(t_b * inv_freq_i)            (phase 0)
    #   emb[b, 2i+1] = sin(t_b * inv_freq_i + pi/2)     = cos(...)
    t_f32 = t_ref[...].astype(jnp.float32)                      # [B, 1]
    ang = t_f32 * freq_ref[...] + phase_ref[...]                 # [B, d_model]
    emb = jnp.sin(ang)                                           # EUP

    # Linear(d_model, dim) + Swish.  bf16 MXU inputs, f32 accumulation,
    # elementwise path stays f32 (v5e-safe).
    h = jnp.dot(emb.astype(w1_ref.dtype), w1_ref[...],
                preferred_element_type=jnp.float32)
    h = h + b1_ref[...]
    h = h * jax.nn.sigmoid(h)

    # Linear(dim, dim) -- only the current N tile of w2 / b2 / out.
    out = jnp.dot(h.astype(w2_ref.dtype), w2_ref[...],
                  preferred_element_type=jnp.float32)
    out_ref[...] = (out + b2_ref[...]).astype(out_ref.dtype)


# ------------------------------ Wrapper ------------------------------------
def time_embedding(t, freq, phase, w1, b1, w2, b2, *, t_max=None, tile_n=512):
    """t: [B] integer timesteps.  Returns [B, dim] float32."""
    B = t.shape[0]
    d_model, dim = w1.shape

    t2d = t.reshape(B, 1).astype(jnp.int32)
    if t_max is not None:
        t2d = jnp.clip(t2d, 0, t_max - 1)   # PyTorch would raise on OOB; clamp instead.

    freq = freq.reshape(1, d_model).astype(jnp.float32)
    phase = phase.reshape(1, d_model).astype(jnp.float32)
    b1 = b1.reshape(1, dim).astype(jnp.float32)
    b2 = b2.reshape(1, dim).astype(jnp.float32)

    # N-tile size: full width at small dims, 512-wide tiles at production dims
    # so the dominant w2 DMA pipelines against compute (and v7x's 2nd TC works).
    tn = dim if (dim <= tile_n or dim % tile_n != 0) else tile_n
    n_tiles = dim // tn

    cost = pl.CostEstimate(
        flops=int(2 * B * d_model * dim * n_tiles + 2 * B * dim * dim),
        transcendentals=int(B * d_model * n_tiles + B * dim * n_tiles),
        bytes_accessed=int(t2d.size * 4 + freq.size * 4 + phase.size * 4
                           + w1.size * w1.dtype.itemsize + b1.size * 4
                           + w2.size * w2.dtype.itemsize + b2.size * 4
                           + B * dim * 4),
    )

    # Rough resident VMEM: whole-array w1 + double-buffered w2/b2/out tiles.
    resident = (w1.size * w1.dtype.itemsize
                + 2 * dim * tn * w2.dtype.itemsize
                + 2 * (B * tn * 4 + tn * 4)
                + 2 * d_model * 4 + dim * 4 + B * 4)
    vmem_limit = None
    if resident > 12 * 1024 * 1024:          # only raise when v5e's 16 MiB default is tight
        vmem_limit = min(int(resident * 2), 60 * 1024 * 1024)

    return pl.pallas_call(
        _time_embedding_kernel,
        out_shape=jax.ShapeDtypeStruct((B, dim), jnp.float32),
        grid=(n_tiles,),
        in_specs=[
            pl.BlockSpec((B, 1), lambda j: (0, 0)),          # t   (resident across j)
            pl.BlockSpec((1, d_model), lambda j: (0, 0)),    # freq
            pl.BlockSpec((1, d_model), lambda j: (0, 0)),    # phase
            pl.BlockSpec((d_model, dim), lambda j: (0, 0)),  # w1  (resident across j)
            pl.BlockSpec((1, dim), lambda j: (0, 0)),        # b1
            pl.BlockSpec((dim, tn), lambda j: (0, j)),       # w2  (N-tiled, pipelined)
            pl.BlockSpec((1, tn), lambda j: (0, j)),         # b2
        ],
        out_specs=pl.BlockSpec((B, tn), lambda j: (0, j)),
        compiler_params=pltpu.CompilerParams(
            dimension_semantics=("parallel",),
            vmem_limit_bytes=vmem_limit,
        ),
        cost_estimate=cost,
    )(t2d, freq, phase, w1, b1, w2, b2)


# --------------------- Deterministic parameter setup -----------------------
def make_freq_phase(d_model):
    # freq[2i] = freq[2i+1] = exp(-(2i)/d_model * log(10000));
    # phase alternates 0 / pi/2 so sin(ang + phase) reproduces the PyTorch
    # interleaved [sin, cos] table layout exactly.
    half = jnp.arange(0, d_model, 2, dtype=jnp.float32) / d_model * math.log(10000.0)
    inv_freq = jnp.exp(-half)                                       # [d_model // 2]
    freq = jnp.repeat(inv_freq, 2).reshape(1, d_model)
    phase = jnp.tile(jnp.array([0.0, math.pi / 2], jnp.float32),
                     d_model // 2).reshape(1, d_model)
    return freq, phase


def make_sinusoidal_table(T, d_model):
    # Mirrors the PyTorch construction exactly (reference only).
    half = jnp.arange(0, d_model, 2, dtype=jnp.float32) / d_model * math.log(10000.0)
    inv_freq = jnp.exp(-half)
    pos = jnp.arange(T, dtype=jnp.float32)
    ang = pos[:, None] * inv_freq[None, :]
    emb = jnp.stack([jnp.sin(ang), jnp.cos(ang)], axis=-1)
    return emb.reshape(T, d_model)


def xavier_uniform(key, fan_in, fan_out):
    bound = math.sqrt(6.0 / (fan_in + fan_out))
    return jax.random.uniform(key, (fan_in, fan_out), jnp.float32, -bound, bound)


# ------------------------------- Main ---------------------------------------
if __name__ == "__main__":
    T, d_model, dim = 100, 128, 128   # small, d_model % 2 == 0, lane-dense dims
    B = 8

    key = jax.random.PRNGKey(0)
    k_t, k_w1, k_w2 = jax.random.split(key, 3)

    t = jax.random.randint(k_t, (B,), 0, T, dtype=jnp.int32)

    freq, phase = make_freq_phase(d_model)
    w1_f32 = xavier_uniform(k_w1, d_model, dim)
    w2_f32 = xavier_uniform(k_w2, dim, dim)
    b1 = jnp.zeros((1, dim), jnp.float32)
    b2 = jnp.zeros((1, dim), jnp.float32)

    # Weights stored/streamed in bf16 (memory-bound kernel -> ~2x fewer bytes).
    w1 = w1_f32.astype(jnp.bfloat16)
    w2 = w2_f32.astype(jnp.bfloat16)

    out = jax.block_until_ready(
        time_embedding(t, freq, phase, w1, b1, w2, b2, t_max=T))

    # Pure-f32 PyTorch-semantics reference (table gather + f32 linears).
    table = make_sinusoidal_table(T, d_model)
    emb_ref = table[t]
    h_ref = emb_ref @ w1_f32 + b1
    h_ref = h_ref * jax.nn.sigmoid(h_ref)
    ref = h_ref @ w2_f32 + b2

    assert out.shape == (B, dim) and out.dtype == jnp.float32
    # Tolerance loosened vs the f32 reference because the kernel streams bf16
    # weights / casts activations to bf16 at the MXU inputs (per perf review).
    assert jnp.allclose(out, ref, atol=3e-2, rtol=3e-2), float(
        jnp.max(jnp.abs(out - ref)))
    print("KERNEL_OK")
</pallas_src>

<mosaic_0001>
module attributes {stable_mosaic.version = 11 : i64} {
  func.func @_time_embedding_kernel(%arg0: i32, %arg1: memref<8x1xi32, #tpu.memory_space<vmem>>, %arg2: memref<1x128xf32, #tpu.memory_space<vmem>>, %arg3: memref<1x128xf32, #tpu.memory_space<vmem>>, %arg4: memref<128x128xbf16, #tpu.memory_space<vmem>>, %arg5: memref<1x128xf32, #tpu.memory_space<vmem>>, %arg6: memref<128x128xbf16, #tpu.memory_space<vmem>>, %arg7: memref<1x128xf32, #tpu.memory_space<vmem>>, %arg8: memref<8x128xf32, #tpu.memory_space<vmem>>) attributes {dimension_semantics = [#tpu.dimension_semantics<parallel>], iteration_bounds = array<i64: 1>, scalar_prefetch = 0 : i64, scratch_operands = 0 : i64, tpu.core_type = #tpu.core_type<tc>, window_params = [{pipeline_mode = #tpu.pipeline_mode<synchronous>, transform_indices = @transform_0, window_bounds = array<i64: 8, 1>}, {pipeline_mode = #tpu.pipeline_mode<synchronous>, transform_indices = @transform_1, window_bounds = array<i64: 1, 128>}, {pipeline_mode = #tpu.pipeline_mode<synchronous>, transform_indices = @transform_2, window_bounds = array<i64: 1, 128>}, {pipeline_mode = #tpu.pipeline_mode<synchronous>, transform_indices = @transform_3, window_bounds = array<i64: 128, 128>}, {pipeline_mode = #tpu.pipeline_mode<synchronous>, transform_indices = @transform_4, window_bounds = array<i64: 1, 128>}, {transform_indices = @transform_5, window_bounds = array<i64: 128, 128>}, {transform_indices = @transform_6, window_bounds = array<i64: 1, 128>}, {transform_indices = @transform_7, window_bounds = array<i64: 8, 128>}]} {
    %c0 = arith.constant 0 : index
    %c0_0 = arith.constant 0 : index
    %0 = vector.load %arg1[%c0, %c0_0] : memref<8x1xi32, #tpu.memory_space<vmem>>, vector<8x1xi32>
    %1 = arith.sitofp %0 : vector<8x1xi32> to vector<8x1xf32>
    %c0_1 = arith.constant 0 : index
    %c0_2 = arith.constant 0 : index
    %2 = vector.load %arg2[%c0_1, %c0_2] : memref<1x128xf32, #tpu.memory_space<vmem>>, vector<1x128xf32>
    %3 = vector.broadcast %1 : vector<8x1xf32> to vector<8x128xf32>
    %4 = vector.broadcast %2 : vector<1x128xf32> to vector<8x128xf32>
    %5 = arith.mulf %3, %4 : vector<8x128xf32>
    %c0_3 = arith.constant 0 : index
    %c0_4 = arith.constant 0 : index
    %6 = vector.load %arg3[%c0_3, %c0_4] : memref<1x128xf32, #tpu.memory_space<vmem>>, vector<1x128xf32>
    %7 = vector.broadcast %6 : vector<1x128xf32> to vector<8x128xf32>
    %8 = arith.addf %5, %7 : vector<8x128xf32>
    %9 = math.sin %8 : vector<8x128xf32>
    %10 = arith.truncf %9 : vector<8x128xf32> to vector<8x128xbf16>
    %c0_5 = arith.constant 0 : index
    %c0_6 = arith.constant 0 : index
    %11 = vector.load %arg4[%c0_5, %c0_6] : memref<128x128xbf16, #tpu.memory_space<vmem>>, vector<128x128xbf16>
    %cst = arith.constant dense<0.000000e+00> : vector<8x128xf32>
    %12 = tpu.matmul %10, %11, %cst {dimension_numbers = #tpu.dot_dimension_numbers<[1], [0], [0], [1], [0, 0, 1, 1], [], []>} : vector<8x128xbf16>, vector<128x128xbf16>, vector<8x128xf32> -> vector<8x128xf32>
    %c0_7 = arith.constant 0 : index
    %c0_8 = arith.constant 0 : index
    %13 = vector.load %arg5[%c0_7, %c0_8] : memref<1x128xf32, #tpu.memory_space<vmem>>, vector<1x128xf32>
    %14 = vector.broadcast %13 : vector<1x128xf32> to vector<8x128xf32>
    %15 = arith.addf %12, %14 : vector<8x128xf32>
    %16 = arith.negf %15 : vector<8x128xf32>
    %17 = math.exp %16 : vector<8x128xf32>
    %cst_9 = arith.constant 1.000000e+00 : f32
    %18 = vector.broadcast %cst_9 : f32 to vector<8x128xf32>
    %19 = arith.addf %18, %17 : vector<8x128xf32>
    %20 = arith.divf %18, %19 : vector<8x128xf32>
    %21 = arith.mulf %15, %20 : vector<8x128xf32>
    %22 = arith.truncf %21 : vector<8x128xf32> to vector<8x128xbf16>
    %c0_10 = arith.constant 0 : index
    %c0_11 = arith.constant 0 : index
    %23 = vector.load %arg6[%c0_10, %c0_11] : memref<128x128xbf16, #tpu.memory_space<vmem>>, vector<128x128xbf16>
    %cst_12 = arith.constant dense<0.000000e+00> : vector<8x128xf32>
    %24 = tpu.matmul %22, %23, %cst_12 {dimension_numbers = #tpu.dot_dimension_numbers<[1], [0], [0], [1], [0, 0, 1, 1], [], []>} : vector<8x128xbf16>, vector<128x128xbf16>, vector<8x128xf32> -> vector<8x128xf32>
    %c0_13 = arith.constant 0 : index
    %c0_14 = arith.constant 0 : index
    %25 = vector.load %arg7[%c0_13, %c0_14] : memref<1x128xf32, #tpu.memory_space<vmem>>, vector<1x128xf32>
    %26 = vector.broadcast %25 : vector<1x128xf32> to vector<8x128xf32>
    %27 = arith.addf %24, %26 : vector<8x128xf32>
    %c0_15 = arith.constant 0 : index
    %c0_16 = arith.constant 0 : index
    %28 = vector.load %arg8[%c0_15, %c0_16] : memref<8x128xf32, #tpu.memory_space<vmem>>, vector<8x128xf32>
    tpu.vector_store %arg8[%c0_15, %c0_16], %27 {strides = array<i32>} : memref<8x128xf32, #tpu.memory_space<vmem>>, vector<8x128xf32>,
    return
  }
  func.func @transform_0(%arg0: i32) -> (i32, i32) {
    %c0_i32 = arith.constant 0 : i32
    %c0_i32_0 = arith.constant 0 : i32
    %c0_i32_1 = arith.constant 0 : i32
    return %c0_i32, %c0_i32_0 : i32, i32
  }
  func.func @transform_1(%arg0: i32) -> (i32, i32) {
    %c0_i32 = arith.constant 0 : i32
    %c0_i32_0 = arith.constant 0 : i32
    %c0_i32_1 = arith.constant 0 : i32
    return %c0_i32, %c0_i32_0 : i32, i32
  }
  func.func @transform_2(%arg0: i32) -> (i32, i32) {
    %c0_i32 = arith.constant 0 : i32
    %c0_i32_0 = arith.constant 0 : i32
    %c0_i32_1 = arith.constant 0 : i32
    return %c0_i32, %c0_i32_0 : i32, i32
  }
  func.func @transform_3(%arg0: i32) -> (i32, i32) {
    %c0_i32 = arith.constant 0 : i32
    %c0_i32_0 = arith.constant 0 : i32
    %c0_i32_1 = arith.constant 0 : i32
    return %c0_i32, %c0_i32_0 : i32, i32
  }
  func.func @transform_4(%arg0: i32) -> (i32, i32) {
    %c0_i32 = arith.constant 0 : i32
    %c0_i32_0 = arith.constant 0 : i32
    %c0_i32_1 = arith.constant 0 : i32
    return %c0_i32, %c0_i32_0 : i32, i32
  }
  func.func @transform_5(%arg0: i32) -> (i32, i32) {
    %c0_i32 = arith.constant 0 : i32
    %c0_i32_0 = arith.constant 0 : i32
    return %c0_i32, %arg0 : i32, i32
  }
  func.func @transform_6(%arg0: i32) -> (i32, i32) {
    %c0_i32 = arith.constant 0 : i32
    %c0_i32_0 = arith.constant 0 : i32
    return %c0_i32, %arg0 : i32, i32
  }
  func.func @transform_7(%arg0: i32) -> (i32, i32) {
    %c0_i32 = arith.constant 0 : i32
    %c0_i32_0 = arith.constant 0 : i32
    return %c0_i32, %arg0 : i32, i32
  }
}

</mosaic_0001>

<bundles_post_ra>
// kernel: tpu_custom_call.1
= control target key start
LH: loop header
LB: loop body
LE: loop exit
PB: predicated region body
PF: predicated region fallthrough
CT: control target
= control target key end

     0   :  { %12 = vsyncpa [#allocation3], 0  ;;  %s773_s0 = inlined_call_operand.vmem [shape: s32[8,1], index: 0, kind: input, shape index: {}]   ;;  %s774_s1 = inlined_call_operand.vmem [shape: f32[1,128], index: 1, kind: input, shape index: {}]   ;;  %s775_s2 = inlined_call_operand.vmem [shape: f32[1,128], index: 2, kind: input, shape index: {}]   ;;  %s776_s3 = inlined_call_operand.hbm [shape: bf16[128,128], index: 3, kind: input, shape index: {}]   ;;  %s777_s4 = inlined_call_operand.vmem [shape: f32[1,128], index: 4, kind: input, shape index: {}]   ;;  %s778_s5 = inlined_call_operand.hbm [shape: bf16[128,128], index: 5, kind: input, shape index: {}]   ;;  %s779_s6 = inlined_call_operand.vmem [shape: f32[1,128], index: 6, kind: input, shape index: {}]   ;;  %s780_s7 = inlined_call_operand.hbm [shape: f32[8,128], index: 7, kind: output, shape index: {}]  }
   0x1   :  { %13 = vsyncpa [#allocation6], 0 }
   0x2   :  { %14 = vsyncpa [#allocation4], 0  ;;  %s629_s24 = smov [#allocation2]   ;;  %s557_s28 = scalar_lea.hbm %s776_s3, 1024 }
   0x3   :  { %s26_s25 = sshll.u32 %s629_s24, 4  ;;  %p558_p0 = scmp.ne.s32.totalorder %s776_s3, %s557_s28  ;;  %s27_s25 = int_to_ptr.vmem [resolvable:$true] %s26_s25 }
   0x4   :  { %p561_p1 = scmp.lt.u32.totalorder %s557_s28, %s776_s3 }
   0x6   :  { %p563_p2 = pnand %p561_p1, %p558_p0 }
   0x8   :  { %566 = shalt.err (!%p563_p2)
}
   0x9   :  { %s567_s10 = scalar_lea.vmem %s27_s25, 1024  ;;  %p572_p4 = scmp.lt.s32.totalorder %s27_s25, %s27_s25 }
   0xa   :  { %p568_p3 = scmp.ne.s32.totalorder %s27_s25, %s567_s10  ;;  %p573_p5 = scmp.lt.s32.totalorder %s567_s10, %s567_s10 }
   0xc   :  { %p574_p6 = por %p573_p5, %p572_p4 }
   0xe   :  { %p575_p7 = pnand %p574_p6, %p568_p3 }
  0x10   :  { %578 = shalt.err (!%p575_p7)
}
  0x11   :  { %s630_s11 = smov 64   ;;  %s631_s12 = smov 4  }
  0x12   :  { %32 = dma.hbm_to_vmem [thread:$0]  %s776_s3, 1024, %s27_s25, [#allocation3], %s630_s11, %s630_s11, %s631_s12  }
  0x13   :  { %s632_s15 = smov [#allocation5]   ;;  %s579_s19 = scalar_lea.hbm %s778_s5, 1024 }
  0x14   :  { %s40_s16 = sshll.u32 %s632_s15, 4  ;;  %p580_p8 = scmp.ne.s32.totalorder %s778_s5, %s579_s19  ;;  %s41_s16 = int_to_ptr.vmem [resolvable:$true] %s40_s16 }
  0x15   :  { %p583_p9 = scmp.lt.u32.totalorder %s579_s19, %s778_s5 }
  0x17   :  { %p585_p10 = pnand %p583_p9, %p580_p8 }
  0x19   :  { %588 = shalt.err (!%p585_p10)
}
  0x1a   :  { %s589_s24 = scalar_lea.vmem %s41_s16, 1024  ;;  %p594_p12 = scmp.lt.s32.totalorder %s41_s16, %s41_s16 }
  0x1b   :  { %p590_p11 = scmp.ne.s32.totalorder %s41_s16, %s589_s24  ;;  %p595_p13 = scmp.lt.s32.totalorder %s589_s24, %s589_s24 }
  0x1d   :  { %p596_p0 = por %p595_p13, %p594_p12 }
  0x1f   :  { %p597_p1 = pnand %p596_p0, %p590_p11 }
  0x21   :  { %600 = shalt.err (!%p597_p1)
}
  0x22   :  { %46 = dma.hbm_to_vmem [thread:$0]  %s778_s5, 1024, %s41_s16, [#allocation6], %s630_s11, %s630_s11, %s631_s12  }
  0x23   :  { %623 = dma.done.wait [#allocation3], 1024  }
  0x24   :  { %624 = vsyncadd [#allocation3], 4294966272 }
  0x25   :  { %625 = dma.done.wait [#allocation6], 1024  }
  0x26   :  { %626 = vsyncadd [#allocation6], 4294966272  ;;  %v633_v0 = vmov 0   ;;  %v56_v1 = vld [vmem:[%s773_s0] sm:$0xff]  ;;  %v634_v4 = vmov 0.0   ;;  %v534_v5 = vld [vmem:[#allocation2 + $0x8] sm:$0xff]  }
  0x27   :  { %532 = vset.pattern.permute.xlu0 %v633_v0  ;;  %v57_v2 = vcvt.s32.f32 %v56_v1  ;;  %v533_v3 = vld [vmem:[#allocation2] sm:$0xff]   ;;  %474 = vmatprep.subr.bf16.mxu0 %v634_v4  ;;  %v535_v6 = vld [vmem:[#allocation2 + $0x10] sm:$0xff]   ;;  %v536_v7 = vld [vmem:[#allocation2 + $0x18] sm:$0xff]   ;;  %vm635_vm0 = vmmov 0   ;;  %v636_v27 = vmov 683565275  }
  0x28   :  { %494 = vmatprep.subr.bf16.mxu1 %v634_v4  ;;  %475 = vmatpush3.bf16.msra.mxu0 %v533_v3  ;;  %v537_v8 = vld [vmem:[#allocation2 + $0x20] sm:$0xff]   ;;  %v538_v9 = vld [vmem:[#allocation2 + $0x28] sm:$0xff]   ;;  %v539_v10 = vld [vmem:[#allocation2 + $0x30] sm:$0xff]   ;;  %v637_v29 = vmov 2475754826   ;;  %s642_s9 = smov [#allocation7]  }
  0x29   :  { %61 = vperm.xlu0 %532, %v57_v2   ;;  %476 = vmatprep.subr.bf16.mxu0 %v634_v4  ;;  %v540_v11 = vld [vmem:[#allocation2 + $0x38] sm:$0xff]   ;;  %v431_v12 = vld [vmem:[%s774_s1] ss:$0 sm:$0xff]  ;;  %v638_v32 = vmov 2131351028  }
  0x2a   :  { %490 = vmatprep.mubr.msk.bf16.mxu0 %vm635_vm0, %v634_v4  ;;  %510 = vmatprep.mubr.msk.bf16.mxu1 %vm635_vm0, %v634_v4  ;;  %v432_v13 = vld [vmem:[%s775_s2] ss:$0 sm:$0xff]  ;;  %v639_v35 = vmov 2102212464   ;;  %v640_v38 = vmov 920167782  }
  0x2b   :  { %v641_v41 = vmov 1326507024  }
  0x2c   :  { %477 = vmatpush3.bf16.msra.mxu0 %v534_v5 }
  0x2d   :  { %478 = vmatprep.subr.bf16.mxu0 %v634_v4 }
  0x30   :  { %479 = vmatpush3.bf16.msra.mxu0 %v535_v6 }
  0x31   :  { %480 = vmatprep.subr.bf16.mxu0 %v634_v4 }
  0x34   :  { %481 = vmatpush3.bf16.msra.mxu0 %v536_v7 }
  0x35   :  { %482 = vmatprep.subr.bf16.mxu0 %v634_v4 }
  0x38   :  { %483 = vmatpush3.bf16.msra.mxu0 %v537_v8 }
  0x39   :  { %484 = vmatprep.subr.bf16.mxu0 %v634_v4 }
  0x3c   :  { %485 = vmatpush3.bf16.msra.mxu0 %v538_v9 }
  0x3d   :  { %486 = vmatprep.subr.bf16.mxu0 %v634_v4 }
  0x40   :  { %487 = vmatpush3.bf16.msra.mxu0 %v539_v10 }
  0x41   :  { %488 = vmatprep.subr.bf16.mxu0 %v634_v4 }
  0x44   :  { %489 = vmatpush3.bf16.msra.mxu0 %v540_v11 }
  0xa8   :  { %v62_v14 = vpop.permute.xlu0 %61 }
  0xa9   :  { %v70_v15 = vmul.f32 %v431_v12, %v62_v14 }
  0xab   :  { %v727_v16 = vadd.f32 %v432_v13, %v70_v15 }
  0xad   :  { %v82_v17 = vand.u32 2139095040, %v727_v16  ;;  %v79_v21 = vand.u32 2147483647, %v727_v16  ;;  %vm81_vm8 = vcmp.lt.s32.totalorder %v727_v16, 0  ;;  %vm171_vm13 = vweird.f32 %v727_v16 }
  0xaf   :  { %v83_v18 = vshrl.u32 %v82_v17, 23  ;;  %v86_v24 = vand.u32 8388607, %v79_v21  ;;  %vm80_vm9 = vcmp.le.f32.partialorder %v79_v21, 0.7853982 }
  0xb1   :  { %v433_v19 = vadd.s32 4294967169, %v83_v18  ;;  %v87_v43 = vor.u32 8388608, %v86_v24 }
  0xb3   :  { %v89_v20 = vadd.s32 1, %v433_v19  ;;  %v127_v57 = vshll.u32 %v87_v43, 8 }
  0xb5   :  { %vm90_vm1 = vcmp.gt.s32.totalorder %v89_v20, 0 }
  0xb6   :  { %v91_v22 = vsel %vm90_vm1, %v89_v20, 0 }
  0xb7   :  { %v93_v23 = vand.u32 31, %v91_v22  ;;  %v92_v26 = vshrl.u32 %v91_v22, 5 }
  0xb9   :  { %v94_v25 = vsub.s32 32, %v93_v23  ;;  %v96_v28 = vshll.u32 %v636_v27, %v93_v23  ;;  %v99_v30 = vshll.u32 %v637_v29, %v93_v23  ;;  %v102_v34 = vshll.u32 %v638_v32, %v93_v23 }
  0xba   :  { %v105_v37 = vshll.u32 %v639_v35, %v93_v23  ;;  %v108_v40 = vshll.u32 %v640_v38, %v93_v23  ;;  %vm111_vm2 = vcmp.lt.s32.totalorder %v92_v26, 1  ;;  %vm114_vm3 = vcmp.lt.s32.totalorder %v92_v26, 4 }
  0xbb   :  { %v97_v31 = vshrl.u32 %v637_v29, %v94_v25  ;;  %v100_v33 = vshrl.u32 %v638_v32, %v94_v25  ;;  %v103_v36 = vshrl.u32 %v639_v35, %v94_v25  ;;  %v106_v39 = vshrl.u32 %v640_v38, %v94_v25 }
  0xbc   :  { %v109_v42 = vshrl.u32 %v641_v41, %v94_v25  ;;  %v95_v52 = vshrl.u32 %v636_v27, %v94_v25  ;;  %vm113_vm4 = vcmp.lt.s32.totalorder %v92_v26, 3  ;;  %vm112_vm5 = vcmp.lt.s32.totalorder %v92_v26, 2 }
  0xbd   :  { %v98_v44 = vor.u32 %v97_v31, %v96_v28  ;;  %v101_v45 = vor.u32 %v100_v33, %v99_v30  ;;  %v104_v46 = vor.u32 %v103_v36, %v102_v34  ;;  %v107_v47 = vor.u32 %v106_v39, %v105_v37 }
  0xbe   :  { %v110_v48 = vor.u32 %v109_v42, %v108_v40 }
  0xbf   :  { %v116_v49 = vsel %vm114_vm3, %v104_v46, 2102212464  ;;  %v119_v50 = vsel %vm111_vm2, %v98_v44, %v101_v45  ;;  %v123_v51 = vsel %vm111_vm2, %v101_v45, %v104_v46  ;;  %v120_v53 = vsel %vm114_vm3, %v107_v47, 920167782 }
  0xc0   :  { %v124_v54 = vsel %vm114_vm3, %v110_v48, 1326507024  ;;  %v121_v55 = vsel %vm113_vm4, %v104_v46, %v120_v53  ;;  %v115_v58 = vsel %vm111_vm2, %v95_v52, %v98_v44  ;;  %v117_v59 = vsel %vm113_vm4, %v101_v45, %v116_v49  ;;  %v542_v48 = vld [vmem:[#allocation5 + $0x8] sm:$0xff]   ;;  %v543_v49 = vld [vmem:[#allocation5 + $0x10] sm:$0xff]   ;;  %v548_v53 = vld [vmem:[#allocation5 + $0x38] sm:$0xff]  }
  0xc1   :  { %v125_v56 = vsel %vm113_vm4, %v107_v47, %v124_v54  ;;  %v122_v60 = vsel %vm112_vm5, %v119_v50, %v121_v55  ;;  %v118_v2 = vsel %vm112_vm5, %v115_v58, %v117_v59  ;;  %v541_v47 = vld [vmem:[#allocation5] sm:$0xff]   ;;  %v544_v50 = vld [vmem:[#allocation5 + $0x18] sm:$0xff]   ;;  %v547_v52 = vld [vmem:[#allocation5 + $0x30] sm:$0xff]  }
  0xc2   :  { %v126_v61 = vsel %vm112_vm5, %v123_v51, %v125_v56  ;;  %v736_v0 = vmul.u32.u64.low %v127_v57, %v122_v60  ;;  %v737_v1 = vmul.u32.u64.high %v127_v57, %v122_v60, %v736_v0  ;;  %v134_v5 = vmul.u32 %v127_v57, %v118_v2  ;;  %495 = vmatpush3.bf16.msra.mxu1 %v541_v47  ;;  %v546_v51 = vld [vmem:[#allocation5 + $0x28] sm:$0xff]   ;;  %v437_v54 = vld [vmem:[%s777_s4] ss:$0 sm:$0xff]  ;;  %s421_s4 = sshll.u32 %s642_s9, 4  ;;  %s422_s4 = int_to_ptr.vmem [resolvable:$true] %s421_s4 }
  0xc3   :  { %v733_v62 = vmul.u32.u64.low %v127_v57, %v126_v61  ;;  %v734_v63 = vmul.u32.u64.high %v127_v57, %v126_v61, %v733_v62  ;;  %496 = vmatprep.subr.bf16.mxu1 %v634_v4  ;;  %s601_s10 = scalar_lea.vmem %s422_s4, 128  ;;  %p606_p3 = scmp.lt.s32.totalorder %s422_s4, %s422_s4 }
  0xc4   :  { %v137_v3 = vadd.s32 1, %v737_v1  ;;  %p602_p2 = scmp.ne.s32.totalorder %s422_s4, %s601_s10  ;;  %p607_p4 = scmp.lt.s32.totalorder %s601_s10, %s601_s10 }
  0xc5   :  { %vm136_vm6 = vc.u32 %v734_v63, %v736_v0  ;;  %v135_v18 = vadd.s32 %v736_v0, %v734_v63 }
  0xc6   :  { %v138_v6 = vsel %vm136_vm6, %v137_v3, %v737_v1  ;;  %497 = vmatpush3.bf16.msra.mxu1 %v542_v48  ;;  %p608_p5 = por %p607_p4, %p606_p3 }
  0xc7   :  { %v139_v7 = vadd.s32 %v138_v6, %v134_v5  ;;  %498 = vmatprep.subr.bf16.mxu1 %v634_v4 }
  0xc8   :  { %p609_p6 = pnand %p608_p5, %p602_p2 }
  0xc9   :  { %v140_v8 = vadd.s32 536870912, %v139_v7 }
  0xca   :  { %499 = vmatpush3.bf16.msra.mxu1 %v543_v49 }
  0xcb   :  { %v141_v9 = vshrl.u32 %v140_v8, 30  ;;  %500 = vmatprep.subr.bf16.mxu1 %v634_v4 }
  0xcd   :  { %v142_v10 = vshll.u32 %v141_v9, 30  ;;  %v165_v31 = vsub.s32 4, %v141_v9 }
  0xce   :  { %501 = vmatpush3.bf16.msra.mxu1 %v544_v50 }
  0xcf   :  { %v143_v11 = vsub.s32 %v139_v7, %v142_v10  ;;  %v166_v34 = vsel %vm81_vm8, %v165_v31, %v141_v9  ;;  %502 = vmatprep.subr.bf16.mxu1 %v634_v4 }
  0xd0   :  { %v168_v36 = vsel %vm80_vm9, 0, %v166_v34 }
  0xd1   :  { %v145_v12 = vsub.s32 0, %v143_v11  ;;  %v172_v37 = vadd.s32 3, %v168_v36 }
  0xd3   :  { %v434_v13 = vmin.u32 %v145_v12, %v143_v11  ;;  %v173_v38 = vand.u32 3, %v172_v37 }
  0xd5   :  { %v147_v14 = vclz %v434_v13  ;;  %vm178_vm10 = vcmp.eq.s32.totalorder %v173_v38, 2  ;;  %vm175_vm11 = vcmp.eq.s32.totalorder %v173_v38, 0  ;;  %vm174_vm12 = vcmp.lt.s32.totalorder %v173_v38, 2 }
  0xd7   :  { %v435_v15 = vadd.s32 4294967294, %v147_v14 }
  0xd9   :  { %vm436_vm7 = vcmp.lt.s32.totalorder %v435_v15, 0 }
  0xda   :  { %v150_v17 = vsel %vm436_vm7, 0, %v435_v15 }
  0xdb   :  { %v151_v19 = vsub.s32 32, %v150_v17  ;;  %v155_v20 = vsub.s32 4294967266, %v150_v17  ;;  %v152_v22 = vshll.u32 %v143_v11, %v150_v17 }
  0xdd   :  { %v153_v23 = vshrl.u32 %v135_v18, %v151_v19  ;;  %v156_v24 = vadd.s32 127, %v155_v20 }
  0xdf   :  { %v154_v25 = vor.u32 %v153_v23, %v152_v22  ;;  %v157_v26 = vshll.u32 %v156_v24, 23 }
  0xe1   :  { %v158_v27 = vor.u32 4788187, %v157_v26  ;;  %v161_v29 = vcvt.s32.f32 %v154_v25 }
  0xe3   :  { %v159_v28 = vand.u32 2147483647, %v158_v27 }
  0xe5   :  { %v162_v30 = vmul.f32 %v161_v29, %v159_v28 }
  0xe7   :  { %v163_v32 = vxor.u32 2147483648, %v162_v30 }
  0xe9   :  { %v164_v33 = vsel %vm81_vm8, %v163_v32, %v162_v30 }
  0xea   :  { %v167_v35 = vsel %vm80_vm9, %v727_v16, %v164_v33  ;;  %v545_v16 = vld [vmem:[#allocation5 + $0x20] sm:$0xff]  }
  0xeb   :  { %549 = vcosq.f32 %v167_v35  ;;  %503 = vmatpush3.bf16.msra.mxu1 %v545_v16 }
  0xec   :  { %551 = vsinq.f32 %v167_v35  ;;  %504 = vmatprep.subr.bf16.mxu1 %v634_v4 }
  0xef   :  { %505 = vmatpush3.bf16.msra.mxu1 %v546_v51 }
  0xf0   :  { %506 = vmatprep.subr.bf16.mxu1 %v634_v4 }
  0xf3   :  { %507 = vmatpush3.bf16.msra.mxu1 %v547_v52 }
  0xf4   :  { %508 = vmatprep.subr.bf16.mxu1 %v634_v4  ;;  %v447_v4 = vld [vmem:[%s779_s6] ss:$0 sm:$0xff] }
  0xf5   :  { %v550_v39 = vpop.eup %549 }
  0xf6   :  { %v552_v40 = vpop.eup %551  ;;  %v179_v41 = vxor.u32 2147483648, %v550_v39 }
  0xf7   :  { %v176_v42 = vxor.u32 2147483648, %v552_v40  ;;  %509 = vmatpush3.bf16.msra.mxu1 %v548_v53 }
  0xf8   :  { %v180_v43 = vsel %vm178_vm10, %v179_v41, %v552_v40 }
  0xf9   :  { %v177_v44 = vsel %vm175_vm11, %v550_v39, %v176_v42 }
  0xfa   :  { %v181_v21 = vsel %vm174_vm12, %v177_v44, %v180_v43 }
  0xfb   :  { %v182_v45 = vsel %vm171_vm13, nan, %v181_v21 }
  0xfc   :  { %v183_v46 = vpack.c.bf16 %v182_v45, %v182_v45 }
  0xfe   :  { %491 = vmatmul.mubr.bf16.vlgmr.msra.gmra.mrb[0].mxu0 %v183_v46 }
 0x1d1   :  { %v289_v55 = vpop.f32.mrb[0].mxu0 }
 0x1d2   :  { %v290_v56 = vadd.f32 %v437_v54, %v289_v55  ;;  %v492_v57 = vpop.f32.mrb[1].mxu0 }
 0x1d3   :  { %v292_v58 = vpop.f32.mrb[2].mxu0 }
 0x1d4   :  { %v446_v59 = vmul.f32 -1.442695, %v290_v56  ;;  %v493_v60 = vpop.f32.mrb[3].mxu0 }
 0x1d6   :  { %553 = vpow2.f32 %v446_v59 }
 0x1e0   :  { %v554_v61 = vpop.eup %553 }
 0x1e1   :  { %v298_v62 = vadd.f32 1.0, %v554_v61 }
 0x1e3   :  { %555 = vrcp.f32 %v298_v62 }
 0x1ed   :  { %v556_v63 = vpop.eup %555 }
 0x1ee   :  { %v301_v0 = vmul.f32 %v556_v63, %v290_v56 }
 0x1f0   :  { %v302_v1 = vpack.c.bf16 %v301_v0, %v301_v0 }
 0x1f2   :  { %511 = vmatmul.mubr.bf16.vlgmr.msra.gmra.mrb[0].mxu1 %v302_v1 }
 0x2c5   :  { %v408_v2 = vpop.f32.mrb[0].mxu1 }
 0x2c6   :  { %v409_v3 = vadd.f32 %v447_v4, %v408_v2  ;;  %v512_v5 = vpop.f32.mrb[1].mxu1 }
 0x2c7   :  { %v411_v6 = vpop.f32.mrb[2].mxu1 }
 0x2c8   :  { %414 = vst [vmem:[#allocation7] sm:$0xff] %v409_v3  ;;  %v513_v7 = vpop.f32.mrb[3].mxu1 }
 0x2c9   :  { %612 = shalt.err (!%p609_p6)
}
 0x2ca   :  { %s613_s6 = scalar_lea.hbm %s780_s7, 128 }
 0x2cb   :  { %p614_p7 = scmp.ne.s32.totalorder %s780_s7, %s613_s6  ;;  %p617_p8 = scmp.lt.u32.totalorder %s613_s6, %s780_s7 }
 0x2cd   :  { %p619_p9 = pnand %p617_p8, %p614_p7 }
 0x2cf   :  { %622 = shalt.err (!%p619_p9)
}
 0x2d0   :  { %424 = dma.vmem_to_hbm [thread:$0]  %s422_s4, 128, %s780_s7, [#allocation4]  }
 0x2d1   :  { %627 = dma.done.wait [#allocation4], 128  }
 0x2d2   :  { %628 = vsyncadd [#allocation4], 4294967168 }
 0x2d3   :  { %428 = vsyncpa [#allocation3], 1 }
 0x2d4   :  { %429 = vsyncpa [#allocation6], 1 }
 0x2d5   :  { %430 = vsyncpa [#allocation4], 1 }

</bundles_post_ra>
